<compile_context>
chip_gen: v6e
topology: v6e:2x2x1
jax: 0.10.0
libtpu: 0.0.40
codegen_flags: <defaults>
</compile_context>

<pallas_src>
import functools

import jax
import jax.numpy as jnp
from jax import lax
from jax.experimental import pallas as pl
from jax.experimental.pallas import tpu as pltpu


def _is_pow2(n):
    return n > 0 and (n & (n - 1)) == 0


def _disp_head_kernel(x_ref, w1_ref, b1_ref, w2_ref, b2_ref, o_ref, *, H, W,
                      b_tile):
    """Fused DispHead for one lane-stacked tile of b_tile images.

    x_ref : (Cin, L)          L = b_tile * H * W, images stacked on lanes
    w1_ref: (hidden, 9*Cin)   conv1 weights, im2col (tap-major, channel-minor)
    b1_ref: (hidden, 1)
    w2_ref: (9*Cout, hidden)  conv2 weights (tap-major, cout-minor rows)
    b2_ref: (Cout, 1)
    o_ref : (Cout, L)
    """
    HW = H * W
    L = b_tile * HW
    cout = o_ref.shape[0]

    x = x_ref[...].astype(jnp.float32)                        # (Cin, L)

    # ---- boundary masks, built ONCE per grid step ---------------------------
    idx = lax.broadcasted_iota(jnp.int32, (1, L), 1)          # global lane idx
    local = jnp.bitwise_and(idx, HW - 1) if _is_pow2(HW) else idx % HW
    if _is_pow2(W):
        col = jnp.bitwise_and(local, W - 1)
        row = jnp.right_shift(local, W.bit_length() - 1)
    else:
        col = local % W
        row = local // W
    left_ok = col != 0                                        # ok for ox == -1
    right_ok = col != (W - 1)                                 # ok for ox == +1
    top_ok = row != 0                                         # ok for oy == -1
    bottom_ok = row != (H - 1)                                # ok for oy == +1

    taps = [(dy - 1, dx - 1) for dy in range(3) for dx in range(3)]

    def tap_mask(oy, ox):
        m = None
        if oy == -1:
            m = top_ok
        elif oy == 1:
            m = bottom_ok
        if ox == -1:
            m = left_ok if m is None else jnp.logical_and(m, left_ok)
        elif ox == 1:
            m = right_ok if m is None else jnp.logical_and(m, right_ok)
        return m                                              # None = center tap

    masks = [tap_mask(oy, ox) for (oy, ox) in taps]

    def shift(a, oy, ox):
        # b[:, p] = a[:, p + s]; wrapped lanes are zeroed by the tap mask.
        s = oy * W + ox
        if s == 0:
            return a
        return pltpu.roll(a, shift=(-s) % L, axis=1)

    # ---- conv1: im2col -> single MXU matmul, fused bias + ReLU --------------
    patch_rows = []
    for (oy, ox), m in zip(taps, masks):
        v = shift(x, oy, ox)
        if m is not None:
            v = jnp.where(m, v, 0.0)
        patch_rows.append(v)
    patches = jnp.concatenate(patch_rows, axis=0)             # (9*Cin, L)

    h = jnp.dot(w1_ref[...].astype(jnp.float32), patches,
                preferred_element_type=jnp.float32)           # (hidden, L)
    h = jnp.maximum(h + b1_ref[...].astype(jnp.float32), 0.0)

    # ---- conv2: contract channels FIRST (MXU), then shift tiny rows ---------
    g = jnp.dot(w2_ref[...].astype(jnp.float32), h,
                preferred_element_type=jnp.float32)           # (9*Cout, L)
    acc = jnp.zeros((cout, L), jnp.float32)
    for t, ((oy, ox), m) in enumerate(zip(taps, masks)):
        g_t = g[t * cout:(t + 1) * cout, :]                   # (Cout, L)
        v = shift(g_t, oy, ox)
        if m is not None:
            v = jnp.where(m, v, 0.0)
        acc = acc + v
    out = acc + b2_ref[...].astype(jnp.float32)
    o_ref[...] = out.astype(o_ref.dtype)


def _pick_b_tile(B, HW, max_lanes=4096):
    """Largest divisor of B whose lane width b_tile*HW stays modest."""
    cap = max(1, max_lanes // HW)
    best = 1
    for d in range(1, B + 1):
        if B % d == 0 and d <= cap:
            best = d
    return best


def disp_head_forward(x_nchw, params, *, b_tile=None):
    """DispHead.forward: conv2(relu(conv1(x))).  NCHW in, NCHW out.

    params use PyTorch layouts:
      w1 (hidden, Cin, 3, 3), b1 (hidden,), w2 (Cout, hidden, 3, 3), b2 (Cout,)
    """
    B, Cin, H, W = x_nchw.shape
    hidden = params["w1"].shape[0]
    Cout = params["w2"].shape[0]
    HW = H * W

    if b_tile is None:
        b_tile = _pick_b_tile(B, HW)
    assert B % b_tile == 0
    L = b_tile * HW

    # Stack images on the lane axis: (Cin, B*HW).  One cheap wrapper-side
    # relayout buys a wide lane-dense N for both matmuls and the output slab.
    x_stacked = jnp.transpose(x_nchw.reshape(B, Cin, HW),
                              (1, 0, 2)).reshape(Cin, B * HW)

    # Weight re-layout (tiny tensors).
    # conv1: column (t*Cin + c) = w1[:, c, ky, kx], t = ky*3 + kx.
    w1_mat = jnp.transpose(params["w1"], (0, 2, 3, 1)).reshape(hidden, 9 * Cin)
    # conv2: row (t*Cout + co) = w2[co, :, ky, kx].
    w2_mat = jnp.transpose(params["w2"], (2, 3, 0, 1)).reshape(9 * Cout, hidden)
    b1_col = params["b1"].reshape(hidden, 1)
    b2_col = params["b2"].reshape(Cout, 1)

    kernel = functools.partial(_disp_head_kernel, H=H, W=W, b_tile=b_tile)

    flops = 2 * B * HW * (9 * Cin * hidden + hidden * 9 * Cout)
    bytes_accessed = 4 * (B * Cin * HW + hidden * 9 * Cin + 9 * Cout * hidden
                          + hidden + Cout + B * Cout * HW)

    out_stacked = pl.pallas_call(
        kernel,
        out_shape=jax.ShapeDtypeStruct((Cout, B * HW), x_nchw.dtype),
        grid=(B // b_tile,),
        in_specs=[
            pl.BlockSpec((Cin, L), lambda i: (0, i)),
            pl.BlockSpec((hidden, 9 * Cin), lambda i: (0, 0)),
            pl.BlockSpec((hidden, 1), lambda i: (0, 0)),
            pl.BlockSpec((9 * Cout, hidden), lambda i: (0, 0)),
            pl.BlockSpec((Cout, 1), lambda i: (0, 0)),
        ],
        out_specs=pl.BlockSpec((Cout, L), lambda i: (0, i)),
        compiler_params=pltpu.CompilerParams(
            dimension_semantics=("parallel",)),
        cost_estimate=pl.CostEstimate(
            flops=flops, transcendentals=0, bytes_accessed=bytes_accessed),
    )(x_stacked, w1_mat, b1_col, w2_mat, b2_col)

    # (Cout, B*HW) -> (B, Cout, H, W); for Cout == 1 this transpose is free.
    return jnp.transpose(out_stacked.reshape(Cout, B, H, W), (1, 0, 2, 3))


def init_params(key, input_dim, hidden_dim, output_dim, dtype=jnp.float32):
    k1, k2, k3, k4 = jax.random.split(key, 4)
    # PyTorch nn.Conv2d weight layout: (Cout, Cin, 3, 3)
    w1 = jax.random.normal(k1, (hidden_dim, input_dim, 3, 3), dtype) * 0.05
    b1 = jax.random.normal(k2, (hidden_dim,), dtype) * 0.05
    w2 = jax.random.normal(k3, (output_dim, hidden_dim, 3, 3), dtype) * 0.05
    b2 = jax.random.normal(k4, (output_dim,), dtype) * 0.05
    return {"w1": w1, "b1": b1, "w2": w2, "b2": b2}


def _reference_forward(x_nchw, params):
    """Pure-JAX reference (lax conv) for correctness check."""
    def conv(x, w_oihw, b):
        y = lax.conv_general_dilated(
            x, w_oihw, window_strides=(1, 1), padding=((1, 1), (1, 1)),
            dimension_numbers=("NCHW", "OIHW", "NCHW"))
        return y + b[None, :, None, None]

    h = jnp.maximum(conv(x_nchw, params["w1"], params["b1"]), 0.0)
    return conv(h, params["w2"], params["b2"])


if __name__ == "__main__":
    key = jax.random.PRNGKey(0)
    kx, kp = jax.random.split(key)

    B, C_IN, H, W = 2, 8, 16, 16
    HIDDEN, C_OUT = 16, 1

    x = jax.random.normal(kx, (B, C_IN, H, W), jnp.float32)
    params = init_params(kp, C_IN, HIDDEN, C_OUT)

    fwd = jax.jit(disp_head_forward)
    out = jax.block_until_ready(fwd(x, params))

    ref = _reference_forward(x, params)
    assert out.shape == (B, C_OUT, H, W), out.shape
    assert jnp.allclose(out, ref, atol=1e-4, rtol=1e-4), "mismatch vs reference"

    print("KERNEL_OK")
</pallas_src>

<mosaic_0001>
module attributes {stable_mosaic.version = 11 : i64} {
  func.func @_disp_head_kernel(%arg0: i32, %arg1: memref<8x512xf32, #tpu.memory_space<vmem>>, %arg2: memref<16x72xf32, #tpu.memory_space<vmem>>, %arg3: memref<16x1xf32, #tpu.memory_space<vmem>>, %arg4: memref<9x16xf32, #tpu.memory_space<vmem>>, %arg5: memref<1x1xf32, #tpu.memory_space<vmem>>, %arg6: memref<1x512xf32, #tpu.memory_space<vmem>>) attributes {dimension_semantics = [#tpu.dimension_semantics<parallel>], iteration_bounds = array<i64: 1>, scalar_prefetch = 0 : i64, scratch_operands = 0 : i64, tpu.core_type = #tpu.core_type<tc>, window_params = [{transform_indices = @transform_0, window_bounds = array<i64: 8, 512>}, {pipeline_mode = #tpu.pipeline_mode<synchronous>, transform_indices = @transform_1, window_bounds = array<i64: 16, 72>}, {pipeline_mode = #tpu.pipeline_mode<synchronous>, transform_indices = @transform_2, window_bounds = array<i64: 16, 1>}, {pipeline_mode = #tpu.pipeline_mode<synchronous>, transform_indices = @transform_3, window_bounds = array<i64: 9, 16>}, {pipeline_mode = #tpu.pipeline_mode<synchronous>, transform_indices = @transform_4, window_bounds = array<i64: 1, 1>}, {transform_indices = @transform_5, window_bounds = array<i64: 1, 512>}]} {
    %c0 = arith.constant 0 : index
    %c0_0 = arith.constant 0 : index
    %0 = vector.load %arg1[%c0, %c0_0] : memref<8x512xf32, #tpu.memory_space<vmem>>, vector<8x512xf32>
    %1 = tpu.iota {dimensions = array<i32: 1>} : vector<1x512xi32>
    %c255_i32 = arith.constant 255 : i32
    %2 = vector.broadcast %c255_i32 : i32 to vector<1x512xi32>
    %3 = arith.andi %1, %2 : vector<1x512xi32>
    %c15_i32 = arith.constant 15 : i32
    %4 = vector.broadcast %c15_i32 : i32 to vector<1x512xi32>
    %5 = arith.andi %3, %4 : vector<1x512xi32>
    %c4_i32 = arith.constant 4 : i32
    %6 = vector.broadcast %c4_i32 : i32 to vector<1x512xi32>
    %7 = arith.shrsi %3, %6 : vector<1x512xi32>
    %c0_i32 = arith.constant 0 : i32
    %8 = vector.broadcast %c0_i32 : i32 to vector<1x512xi32>
    %9 = arith.cmpi ne, %5, %8 : vector<1x512xi32>
    %c15_i32_1 = arith.constant 15 : i32
    %10 = vector.broadcast %c15_i32_1 : i32 to vector<1x512xi32>
    %11 = arith.cmpi ne, %5, %10 : vector<1x512xi32>
    %c0_i32_2 = arith.constant 0 : i32
    %12 = vector.broadcast %c0_i32_2 : i32 to vector<1x512xi32>
    %13 = arith.cmpi ne, %7, %12 : vector<1x512xi32>
    %c15_i32_3 = arith.constant 15 : i32
    %14 = vector.broadcast %c15_i32_3 : i32 to vector<1x512xi32>
    %15 = arith.cmpi ne, %7, %14 : vector<1x512xi32>
    %16 = arith.andi %13, %9 : vector<1x512xi1>
    %17 = arith.andi %13, %11 : vector<1x512xi1>
    %18 = arith.andi %15, %9 : vector<1x512xi1>
    %19 = arith.andi %15, %11 : vector<1x512xi1>
    %c17_i32 = arith.constant 17 : i32
    %20 = tpu.dynamic_rotate %0 by %c17_i32 dim 1 : vector<8x512xf32>, i32 -> vector<8x512xf32>
    %cst = arith.constant 0.000000e+00 : f32
    %21 = vector.shape_cast %16 : vector<1x512xi1> to vector<1x512xi1>
    %22 = vector.broadcast %21 : vector<1x512xi1> to vector<8x512xi1>
    %23 = vector.broadcast %cst : f32 to vector<8x512xf32>
    %24 = arith.select %22, %20, %23 : vector<8x512xi1>, vector<8x512xf32>
    %c16_i32 = arith.constant 16 : i32
    %25 = tpu.dynamic_rotate %0 by %c16_i32 dim 1 : vector<8x512xf32>, i32 -> vector<8x512xf32>
    %cst_4 = arith.constant 0.000000e+00 : f32
    %26 = vector.shape_cast %13 : vector<1x512xi1> to vector<1x512xi1>
    %27 = vector.broadcast %26 : vector<1x512xi1> to vector<8x512xi1>
    %28 = vector.broadcast %cst_4 : f32 to vector<8x512xf32>
    %29 = arith.select %27, %25, %28 : vector<8x512xi1>, vector<8x512xf32>
    %c15_i32_5 = arith.constant 15 : i32
    %30 = tpu.dynamic_rotate %0 by %c15_i32_5 dim 1 : vector<8x512xf32>, i32 -> vector<8x512xf32>
    %cst_6 = arith.constant 0.000000e+00 : f32
    %31 = vector.shape_cast %17 : vector<1x512xi1> to vector<1x512xi1>
    %32 = vector.broadcast %31 : vector<1x512xi1> to vector<8x512xi1>
    %33 = vector.broadcast %cst_6 : f32 to vector<8x512xf32>
    %34 = arith.select %32, %30, %33 : vector<8x512xi1>, vector<8x512xf32>
    %c1_i32 = arith.constant 1 : i32
    %35 = tpu.dynamic_rotate %0 by %c1_i32 dim 1 : vector<8x512xf32>, i32 -> vector<8x512xf32>
    %cst_7 = arith.constant 0.000000e+00 : f32
    %36 = vector.shape_cast %9 : vector<1x512xi1> to vector<1x512xi1>
    %37 = vector.broadcast %36 : vector<1x512xi1> to vector<8x512xi1>
    %38 = vector.broadcast %cst_7 : f32 to vector<8x512xf32>
    %39 = arith.select %37, %35, %38 : vector<8x512xi1>, vector<8x512xf32>
    %c511_i32 = arith.constant 511 : i32
    %40 = tpu.dynamic_rotate %0 by %c511_i32 dim 1 : vector<8x512xf32>, i32 -> vector<8x512xf32>
    %cst_8 = arith.constant 0.000000e+00 : f32
    %41 = vector.shape_cast %11 : vector<1x512xi1> to vector<1x512xi1>
    %42 = vector.broadcast %41 : vector<1x512xi1> to vector<8x512xi1>
    %43 = vector.broadcast %cst_8 : f32 to vector<8x512xf32>
    %44 = arith.select %42, %40, %43 : vector<8x512xi1>, vector<8x512xf32>
    %c497_i32 = arith.constant 497 : i32
    %45 = tpu.dynamic_rotate %0 by %c497_i32 dim 1 : vector<8x512xf32>, i32 -> vector<8x512xf32>
    %cst_9 = arith.constant 0.000000e+00 : f32
    %46 = vector.shape_cast %18 : vector<1x512xi1> to vector<1x512xi1>
    %47 = vector.broadcast %46 : vector<1x512xi1> to vector<8x512xi1>
    %48 = vector.broadcast %cst_9 : f32 to vector<8x512xf32>
    %49 = arith.select %47, %45, %48 : vector<8x512xi1>, vector<8x512xf32>
    %c496_i32 = arith.constant 496 : i32
    %50 = tpu.dynamic_rotate %0 by %c496_i32 dim 1 : vector<8x512xf32>, i32 -> vector<8x512xf32>
    %cst_10 = arith.constant 0.000000e+00 : f32
    %51 = vector.shape_cast %15 : vector<1x512xi1> to vector<1x512xi1>
    %52 = vector.broadcast %51 : vector<1x512xi1> to vector<8x512xi1>
    %53 = vector.broadcast %cst_10 : f32 to vector<8x512xf32>
    %54 = arith.select %52, %50, %53 : vector<8x512xi1>, vector<8x512xf32>
    %c495_i32 = arith.constant 495 : i32
    %55 = tpu.dynamic_rotate %0 by %c495_i32 dim 1 : vector<8x512xf32>, i32 -> vector<8x512xf32>
    %cst_11 = arith.constant 0.000000e+00 : f32
    %56 = vector.shape_cast %19 : vector<1x512xi1> to vector<1x512xi1>
    %57 = vector.broadcast %56 : vector<1x512xi1> to vector<8x512xi1>
    %58 = vector.broadcast %cst_11 : f32 to vector<8x512xf32>
    %59 = arith.select %57, %55, %58 : vector<8x512xi1>, vector<8x512xf32>
    %60 = tpu.concatenate %24, %29, %34, %39, %0, %44, %49, %54, %59 in 0 : vector<8x512xf32>, vector<8x512xf32>, vector<8x512xf32>, vector<8x512xf32>, vector<8x512xf32>, vector<8x512xf32>, vector<8x512xf32>, vector<8x512xf32>, vector<8x512xf32> -> vector<72x512xf32>
    %c0_12 = arith.constant 0 : index
    %c0_13 = arith.constant 0 : index
    %61 = vector.load %arg2[%c0_12, %c0_13] : memref<16x72xf32, #tpu.memory_space<vmem>>, vector<16x72xf32>
    %cst_14 = arith.constant dense<0.000000e+00> : vector<16x512xf32>
    %62 = tpu.matmul %61, %60, %cst_14 {dimension_numbers = #tpu.dot_dimension_numbers<[1], [0], [0], [1], [0, 0, 1, 1], [], []>} : vector<16x72xf32>, vector<72x512xf32>, vector<16x512xf32> -> vector<16x512xf32>
    %c0_15 = arith.constant 0 : index
    %c0_16 = arith.constant 0 : index
    %63 = vector.load %arg3[%c0_15, %c0_16] : memref<16x1xf32, #tpu.memory_space<vmem>>, vector<16x1xf32>
    %64 = vector.broadcast %63 : vector<16x1xf32> to vector<16x512xf32>
    %65 = arith.addf %62, %64 : vector<16x512xf32>
    %cst_17 = arith.constant 0.000000e+00 : f32
    %66 = vector.broadcast %cst_17 : f32 to vector<16x512xf32>
    %67 = arith.maximumf %65, %66 : vector<16x512xf32>
    %c0_18 = arith.constant 0 : index
    %c0_19 = arith.constant 0 : index
    %68 = vector.load %arg4[%c0_18, %c0_19] : memref<9x16xf32, #tpu.memory_space<vmem>>, vector<9x16xf32>
    %cst_20 = arith.constant dense<0.000000e+00> : vector<9x512xf32>
    %69 = tpu.matmul %68, %67, %cst_20 {dimension_numbers = #tpu.dot_dimension_numbers<[1], [0], [0], [1], [0, 0, 1, 1], [], []>} : vector<9x16xf32>, vector<16x512xf32>, vector<9x512xf32> -> vector<9x512xf32>
    %cst_21 = arith.constant 0.000000e+00 : f32
    %70 = vector.broadcast %cst_21 : f32 to vector<1x512xf32>
    %71 = vector.extract_strided_slice %69 {offsets = [0, 0], sizes = [1, 512], strides = [1, 1]} : vector<9x512xf32> to vector<1x512xf32>
    %c17_i32_22 = arith.constant 17 : i32
    %72 = tpu.dynamic_rotate %71 by %c17_i32_22 dim 1 : vector<1x512xf32>, i32 -> vector<1x512xf32>
    %cst_23 = arith.constant 0.000000e+00 : f32
    %73 = vector.broadcast %cst_23 : f32 to vector<1x512xf32>
    %74 = arith.select %16, %72, %73 : vector<1x512xi1>, vector<1x512xf32>
    %75 = arith.addf %70, %74 : vector<1x512xf32>
    %76 = vector.extract_strided_slice %69 {offsets = [1, 0], sizes = [1, 512], strides = [1, 1]} : vector<9x512xf32> to vector<1x512xf32>
    %c16_i32_24 = arith.constant 16 : i32
    %77 = tpu.dynamic_rotate %76 by %c16_i32_24 dim 1 : vector<1x512xf32>, i32 -> vector<1x512xf32>
    %cst_25 = arith.constant 0.000000e+00 : f32
    %78 = vector.broadcast %cst_25 : f32 to vector<1x512xf32>
    %79 = arith.select %13, %77, %78 : vector<1x512xi1>, vector<1x512xf32>
    %80 = arith.addf %75, %79 : vector<1x512xf32>
    %81 = vector.extract_strided_slice %69 {offsets = [2, 0], sizes = [1, 512], strides = [1, 1]} : vector<9x512xf32> to vector<1x512xf32>
    %c15_i32_26 = arith.constant 15 : i32
    %82 = tpu.dynamic_rotate %81 by %c15_i32_26 dim 1 : vector<1x512xf32>, i32 -> vector<1x512xf32>
    %cst_27 = arith.constant 0.000000e+00 : f32
    %83 = vector.broadcast %cst_27 : f32 to vector<1x512xf32>
    %84 = arith.select %17, %82, %83 : vector<1x512xi1>, vector<1x512xf32>
    %85 = arith.addf %80, %84 : vector<1x512xf32>
    %86 = vector.extract_strided_slice %69 {offsets = [3, 0], sizes = [1, 512], strides = [1, 1]} : vector<9x512xf32> to vector<1x512xf32>
    %c1_i32_28 = arith.constant 1 : i32
    %87 = tpu.dynamic_rotate %86 by %c1_i32_28 dim 1 : vector<1x512xf32>, i32 -> vector<1x512xf32>
    %cst_29 = arith.constant 0.000000e+00 : f32
    %88 = vector.broadcast %cst_29 : f32 to vector<1x512xf32>
    %89 = arith.select %9, %87, %88 : vector<1x512xi1>, vector<1x512xf32>
    %90 = arith.addf %85, %89 : vector<1x512xf32>
    %91 = vector.extract_strided_slice %69 {offsets = [4, 0], sizes = [1, 512], strides = [1, 1]} : vector<9x512xf32> to vector<1x512xf32>
    %92 = arith.addf %90, %91 : vector<1x512xf32>
    %93 = vector.extract_strided_slice %69 {offsets = [5, 0], sizes = [1, 512], strides = [1, 1]} : vector<9x512xf32> to vector<1x512xf32>
    %c511_i32_30 = arith.constant 511 : i32
    %94 = tpu.dynamic_rotate %93 by %c511_i32_30 dim 1 : vector<1x512xf32>, i32 -> vector<1x512xf32>
    %cst_31 = arith.constant 0.000000e+00 : f32
    %95 = vector.broadcast %cst_31 : f32 to vector<1x512xf32>
    %96 = arith.select %11, %94, %95 : vector<1x512xi1>, vector<1x512xf32>
    %97 = arith.addf %92, %96 : vector<1x512xf32>
    %98 = vector.extract_strided_slice %69 {offsets = [6, 0], sizes = [1, 512], strides = [1, 1]} : vector<9x512xf32> to vector<1x512xf32>
    %c497_i32_32 = arith.constant 497 : i32
    %99 = tpu.dynamic_rotate %98 by %c497_i32_32 dim 1 : vector<1x512xf32>, i32 -> vector<1x512xf32>
    %cst_33 = arith.constant 0.000000e+00 : f32
    %100 = vector.broadcast %cst_33 : f32 to vector<1x512xf32>
    %101 = arith.select %18, %99, %100 : vector<1x512xi1>, vector<1x512xf32>
    %102 = arith.addf %97, %101 : vector<1x512xf32>
    %103 = vector.extract_strided_slice %69 {offsets = [7, 0], sizes = [1, 512], strides = [1, 1]} : vector<9x512xf32> to vector<1x512xf32>
    %c496_i32_34 = arith.constant 496 : i32
    %104 = tpu.dynamic_rotate %103 by %c496_i32_34 dim 1 : vector<1x512xf32>, i32 -> vector<1x512xf32>
    %cst_35 = arith.constant 0.000000e+00 : f32
    %105 = vector.broadcast %cst_35 : f32 to vector<1x512xf32>
    %106 = arith.select %15, %104, %105 : vector<1x512xi1>, vector<1x512xf32>
    %107 = arith.addf %102, %106 : vector<1x512xf32>
    %108 = vector.extract_strided_slice %69 {offsets = [8, 0], sizes = [1, 512], strides = [1, 1]} : vector<9x512xf32> to vector<1x512xf32>
    %c495_i32_36 = arith.constant 495 : i32
    %109 = tpu.dynamic_rotate %108 by %c495_i32_36 dim 1 : vector<1x512xf32>, i32 -> vector<1x512xf32>
    %cst_37 = arith.constant 0.000000e+00 : f32
    %110 = vector.broadcast %cst_37 : f32 to vector<1x512xf32>
    %111 = arith.select %19, %109, %110 : vector<1x512xi1>, vector<1x512xf32>
    %112 = arith.addf %107, %111 : vector<1x512xf32>
    %c0_38 = arith.constant 0 : index
    %c0_39 = arith.constant 0 : index
    %113 = vector.load %arg5[%c0_38, %c0_39] : memref<1x1xf32, #tpu.memory_space<vmem>>, vector<1x1xf32>
    %114 = vector.broadcast %113 : vector<1x1xf32> to vector<1x512xf32>
    %115 = arith.addf %112, %114 : vector<1x512xf32>
    %c0_40 = arith.constant 0 : index
    %c0_41 = arith.constant 0 : index
    %116 = vector.load %arg6[%c0_40, %c0_41] : memref<1x512xf32, #tpu.memory_space<vmem>>, vector<1x512xf32>
    tpu.vector_store %arg6[%c0_40, %c0_41], %115 {strides = array<i32>} : memref<1x512xf32, #tpu.memory_space<vmem>>, vector<1x512xf32>,
    return
  }
  func.func @transform_0(%arg0: i32) -> (i32, i32) {
    %c0_i32 = arith.constant 0 : i32
    %c0_i32_0 = arith.constant 0 : i32
    return %c0_i32, %arg0 : i32, i32
  }
  func.func @transform_1(%arg0: i32) -> (i32, i32) {
    %c0_i32 = arith.constant 0 : i32
    %c0_i32_0 = arith.constant 0 : i32
    %c0_i32_1 = arith.constant 0 : i32
    return %c0_i32, %c0_i32_0 : i32, i32
  }
  func.func @transform_2(%arg0: i32) -> (i32, i32) {
    %c0_i32 = arith.constant 0 : i32
    %c0_i32_0 = arith.constant 0 : i32
    %c0_i32_1 = arith.constant 0 : i32
    return %c0_i32, %c0_i32_0 : i32, i32
  }
  func.func @transform_3(%arg0: i32) -> (i32, i32) {
    %c0_i32 = arith.constant 0 : i32
    %c0_i32_0 = arith.constant 0 : i32
    %c0_i32_1 = arith.constant 0 : i32
    return %c0_i32, %c0_i32_0 : i32, i32
  }
  func.func @transform_4(%arg0: i32) -> (i32, i32) {
    %c0_i32 = arith.constant 0 : i32
    %c0_i32_0 = arith.constant 0 : i32
    %c0_i32_1 = arith.constant 0 : i32
    return %c0_i32, %c0_i32_0 : i32, i32
  }
  func.func @transform_5(%arg0: i32) -> (i32, i32) {
    %c0_i32 = arith.constant 0 : i32
    %c0_i32_0 = arith.constant 0 : i32
    return %c0_i32, %arg0 : i32, i32
  }
}

</mosaic_0001>

<bundles_post_ra>
// kernel: disp_head_forward.1
= control target key start
LH: loop header
LB: loop body
LE: loop exit
PB: predicated region body
PF: predicated region fallthrough
CT: control target
= control target key end

     0   :  { %s950_s22 = smov 111   ;;  %s951_s27 = smov 112   ;;  %v957_v4 = vmov 0.0   ;;  %v958_v5 = vmov 0   ;;  %v26_v10 = vlaneseq  ;;  %v1672_v29 = vmov 0  ;;  %s1635_s0 = inlined_call_operand.vmem [shape: f32[8,512], index: 0, kind: input, shape index: {}]   ;;  %s1636_s4 = inlined_call_operand.<no memory space> [shape: f32[1,1], index: 4, kind: input, shape index: {}]   ;;  %s1637_s2 = inlined_call_operand.vmem [shape: f32[16,1], index: 2, kind: input, shape index: {}]   ;;  %s1638_s1 = inlined_call_operand.vmem [shape: f32[16,72], index: 1, kind: input, shape index: {}]   ;;  %s1639_s3 = inlined_call_operand.vmem [shape: f32[9,16], index: 3, kind: input, shape index: {}]   ;;  %s1640_s5 = inlined_call_operand.vmem [shape: f32[1,512], index: 5, kind: output, shape index: {}]  }
   0x1   :  { %v994_v0 = vld [vmem:[%s1635_s0 + $0x10] sm:$0xff]  ;;  %v999_v1 = vld [vmem:[%s1635_s0] sm:$0xff]  ;;  %v1008_v2 = vld [vmem:[%s1635_s0 + $0x18] sm:$0xff]  ;;  %s953_s28 = smov 127   ;;  %s954_s29 = smov 1   ;;  %360 = vmatprep.mubr.f32.mxu0 %v957_v4  ;;  %437 = vmatprep.mubr.f32.mxu1 %v957_v4  ;;  %v10_v6 = vstv %s1636_s4  ;;  %v1674_v30 = vmov 0 }
   0x2   :  { %254 = vrot.lane.b32.xlu1 %v994_v0, %s950_s22  ;;  %250 = vrot.lane.b32.xlu0 %v999_v1, %s950_s22  ;;  %v1013_v3 = vld [vmem:[%s1635_s0 + $0x8] sm:$0xff]  ;;  %s952_s0 = smov 113   ;;  %s955_s30 = smov 15   ;;  %11 = vst [vmem:[#allocation2] sm:$0x1] %v10_v6  ;;  %v277_v7 = vld [vmem:[%s1637_s2] sm:$0xff] }
   0x3   :  { %s956_s6 = smov 16   ;;  %949 = vset.pattern.permute.xlu1 %v958_v5  ;;  %948 = vset.pattern.permute.xlu0 %v958_v5  ;;  %s959_s9 = smov 17   ;;  %v278_v8 = vld [vmem:[%s1637_s2 + $0x8] sm:$0xff]  ;;  %v1087_v11 = vand.u32 127, %v26_v10  ;;  %v1676_v31 = vmov 0  ;;  %v1678_v34 = vmov 0 }
   0x4   :  { %v1680_v49 = vmov 0  ;;  %v1682_v50 = vmov 0  ;;  %v1686_v54 = vmov 0 }
   0x5   :  { %v28_v12 = vadd.s32 128, %v1087_v11  ;;  %v30_v13 = vadd.s32 384, %v1087_v11  ;;  %v29_v14 = vadd.s32 256, %v1087_v11  ;;  %v31_v15 = vand.u32 255, %v1087_v11 }
   0x6   :  { %256 = vrot.lane.b32.xlu1 %v1008_v2, %s950_s22  ;;  %252 = vrot.lane.b32.xlu0 %v1013_v3, %s950_s22  ;;  %vm1641_vm10 = vcmp.lt.s32.totalorder %v1087_v11, 111  ;;  %vm1642_vm13 = vcmp.lt.s32.totalorder %v1087_v11, 112 }
   0x7   :  { %v32_v16 = vand.u32 255, %v28_v12  ;;  %v34_v17 = vand.u32 255, %v30_v13  ;;  %v33_v18 = vand.u32 255, %v29_v14  ;;  %v1093_v19 = vand.u32 15, %v31_v15 }
   0x8   :  { %v1095_v20 = vshra.s32 %v31_v15, 4 }
   0x9   :  { %v845_v9 = vld [vmem:[#allocation2] sm:$0x1]  ;;  %v1097_v21 = vand.u32 15, %v32_v16  ;;  %v1099_v22 = vshra.s32 %v32_v16, 4  ;;  %v1101_v23 = vand.u32 15, %v34_v17  ;;  %v1103_v24 = vshra.s32 %v34_v17, 4 }
   0xa   :  { %227 = vrot.lane.b32.xlu1 %v1013_v3, %s951_s27  ;;  %225 = vrot.lane.b32.xlu0 %v999_v1, %s951_s27  ;;  %v1105_v25 = vand.u32 15, %v33_v18  ;;  %v1107_v26 = vshra.s32 %v33_v18, 4  ;;  %vm1644_vm0 = vcmp.ne.s32.totalorder %v1093_v19, 15  ;;  %vm1649_vm1 = vcmp.ne.s32.totalorder %v1095_v20, 15 }
   0xb   :  { %vm1657_vm2 = vcmp.ne.s32.totalorder %v1097_v21, 15  ;;  %vm1646_vm3 = vcmp.ne.s32.totalorder %v1099_v22, 15  ;;  %vm1645_vm4 = vcmp.ne.s32.totalorder %v1101_v23, 15  ;;  %vm1647_vm5 = vcmp.ne.s32.totalorder %v1103_v24, 15  ;;  %vm1119_vm6 = vmand %vm1649_vm1, %vm1644_vm0 }
   0xc   :  { %v1673_v29 = vsel %vm1119_vm6, 4294967295, %v1672_v29  ;;  %vm1643_vm7 = vcmp.ne.s32.totalorder %v1105_v25, 15  ;;  %vm1648_vm8 = vcmp.ne.s32.totalorder %v1107_v26, 15  ;;  %vm1129_vm9 = vmand %vm1646_vm3, %vm1657_vm2  ;;  %vm1654_vm14 = vcmp.ne.s32.totalorder %v1097_v21, 0 }
   0xd   :  { %v1675_v30 = vsel %vm1129_vm9, 4294967295, %v1674_v30  ;;  %vm1138_vm11 = vmand %vm1647_vm5, %vm1645_vm4  ;;  %vm1652_vm15 = vcmp.ne.s32.totalorder %v1101_v23, 0  ;;  %vm1650_vm4 = vcmp.lt.s32.totalorder %v1087_v11, 113 }
   0xe   :  { %231 = vrot.lane.b32.xlu1 %v1008_v2, %s951_s27  ;;  %229 = vrot.lane.b32.xlu0 %v994_v0, %s951_s27  ;;  %v1677_v31 = vsel %vm1138_vm11, 4294967295, %v1676_v31  ;;  %vm1146_vm12 = vmand %vm1648_vm8, %vm1643_vm7  ;;  %vm1651_vm7 = vcmp.ne.s32.totalorder %v1105_v25, 0 }
   0xf   :  { %v1679_v34 = vsel %vm1146_vm12, 4294967295, %v1678_v34  ;;  %vm1199_vm0 = vmand %vm1647_vm5, %vm1652_vm15  ;;  %vm1690_vm15 = vcmp.ne.s32.totalorder %v1105_v25, 15 }
  0x10   :  { %v1683_v50 = vsel %vm1199_vm0, 4294967295, %v1682_v50 }
  0x12   :  { %202 = vrot.lane.b32.xlu1 %v1013_v3, %s952_s0  ;;  %200 = vrot.lane.b32.xlu0 %v999_v1, %s952_s0 }
  0x16   :  { %206 = vrot.lane.b32.xlu1 %v1008_v2, %s952_s0  ;;  %204 = vrot.lane.b32.xlu0 %v994_v0, %s952_s0 }
  0x1a   :  { %177 = vrot.lane.b32.xlu1 %v1013_v3, %s953_s28  ;;  %175 = vrot.lane.b32.xlu0 %v999_v1, %s953_s28 }
  0x1e   :  { %181 = vrot.lane.b32.xlu1 %v1008_v2, %s953_s28  ;;  %179 = vrot.lane.b32.xlu0 %v994_v0, %s953_s28 }
  0x22   :  { %152 = vrot.lane.b32.xlu1 %v1013_v3, %s954_s29  ;;  %150 = vrot.lane.b32.xlu0 %v999_v1, %s954_s29 }
  0x26   :  { %156 = vrot.lane.b32.xlu1 %v1008_v2, %s954_s29  ;;  %154 = vrot.lane.b32.xlu0 %v994_v0, %s954_s29 }
  0x2a   :  { %127 = vrot.lane.b32.xlu1 %v1013_v3, %s955_s30  ;;  %125 = vrot.lane.b32.xlu0 %v999_v1, %s955_s30 }
  0x2e   :  { %131 = vrot.lane.b32.xlu1 %v1008_v2, %s955_s30  ;;  %129 = vrot.lane.b32.xlu0 %v994_v0, %s955_s30 }
  0x32   :  { %102 = vrot.lane.b32.xlu1 %v1013_v3, %s956_s6  ;;  %100 = vrot.lane.b32.xlu0 %v999_v1, %s956_s6 }
  0x36   :  { %106 = vrot.lane.b32.xlu1 %v1008_v2, %s956_s6  ;;  %104 = vrot.lane.b32.xlu0 %v994_v0, %s956_s6 }
  0x3a   :  { %77 = vrot.lane.b32.xlu1 %v1013_v3, %s959_s9  ;;  %75 = vrot.lane.b32.xlu0 %v999_v1, %s959_s9 }
  0x3e   :  { %81 = vrot.lane.b32.xlu1 %v1008_v2, %s959_s9  ;;  %79 = vrot.lane.b32.xlu0 %v994_v0, %s959_s9 }
  0x42   :  { %281 = vperm.xlu1 %949, %v277_v7   ;;  %286 = vperm.xlu0 %948, %v278_v8  }
  0x46   :  { %848 = vperm.xlu1 %949, %v845_v9  }
  0x74   :  { %v255_v27 = vpop.permute.xlu1 %254  ;;  %v251_v28 = vpop.permute.xlu0 %250 }
  0x78   :  { %v257_v32 = vpop.permute.xlu1 %256  ;;  %v253_v33 = vpop.permute.xlu0 %252 }
  0x79   :  { %v260_v35 = vsel %vm1641_vm10, %v253_v33, %v255_v27  ;;  %v262_v36 = vsel %vm1641_vm10, %v257_v32, %v251_v28  ;;  %v261_v37 = vsel %vm1641_vm10, %v251_v28, %v253_v33  ;;  %v259_v38 = vsel %vm1641_vm10, %v255_v27, %v257_v32 }
  0x7a   :  { %897 = vmatprep.subr.msk.mxu0 %vm1129_vm9, %v260_v35  ;;  %915 = vmatprep.subr.msk.mxu1 %vm1138_vm11, %v262_v36  ;;  %vm1656_vm10 = vcmp.ne.s32.totalorder %v1093_v19, 0  ;;  %vm1710_vm11 = vcmp.ne.s32.totalorder %v1099_v22, 0 }
  0x7b   :  { %898 = vmatpush1.msk.msra.mxu0 %vm1119_vm6, %v261_v37  ;;  %916 = vmatpush1.msk.msra.mxu1 %vm1146_vm12, %v259_v38 }
  0x7c   :  { %v228_v39 = vpop.permute.xlu1 %227  ;;  %v226_v40 = vpop.permute.xlu0 %225 }
  0x7d   :  { %v236_v46 = vsel %vm1642_vm13, %v226_v40, %v228_v39 }
  0x80   :  { %v232_v41 = vpop.permute.xlu1 %231  ;;  %v230_v42 = vpop.permute.xlu0 %229 }
  0x81   :  { %v237_v43 = vsel %vm1642_vm13, %v232_v41, %v226_v40  ;;  %v234_v44 = vsel %vm1642_vm13, %v230_v42, %v232_v41  ;;  %v235_v45 = vsel %vm1642_vm13, %v228_v39, %v230_v42  ;;  %vm1190_vm13 = vmand %vm1646_vm3, %vm1654_vm14 }
  0x82   :  { %899 = vmatprep.subr.msk.mxu0 %vm1646_vm3, %v235_v45  ;;  %917 = vmatprep.subr.msk.mxu1 %vm1647_vm5, %v237_v43  ;;  %v1681_v49 = vsel %vm1190_vm13, 4294967295, %v1680_v49  ;;  %vm1208_vm3 = vmand %vm1649_vm1, %vm1656_vm10 }
  0x83   :  { %900 = vmatpush1.msk.msra.mxu0 %vm1649_vm1, %v236_v46  ;;  %918 = vmatpush1.msk.msra.mxu1 %vm1648_vm8, %v234_v44  ;;  %vm1216_vm5 = vmand %vm1648_vm8, %vm1651_vm7  ;;  %vm1653_vm8 = vcmp.lt.s32.totalorder %v1087_v11, 127  ;;  %vm1688_vm1 = vcmp.ne.s32.totalorder %v1101_v23, 15  ;;  %vm1689_vm7 = vcmp.ne.s32.totalorder %v1093_v19, 15 }
  0x84   :  { %v203_v47 = vpop.permute.xlu1 %202  ;;  %v201_v48 = vpop.permute.xlu0 %200  ;;  %v1687_v54 = vsel %vm1216_vm5, 4294967295, %v1686_v54 }
  0x85   :  { %v211_v58 = vsel %vm1650_vm4, %v201_v48, %v203_v47 }
  0x88   :  { %v207_v52 = vpop.permute.xlu1 %206  ;;  %v205_v53 = vpop.permute.xlu0 %204 }
  0x89   :  { %v212_v55 = vsel %vm1650_vm4, %v207_v52, %v201_v48  ;;  %v209_v56 = vsel %vm1650_vm4, %v205_v53, %v207_v52  ;;  %v210_v57 = vsel %vm1650_vm4, %v203_v47, %v205_v53  ;;  %vm1655_vm4 = vcmp.lt.s32.totalorder %v1087_v11, 1 }
  0x8a   :  { %901 = vmatprep.subr.msk.mxu0 %vm1190_vm13, %v210_v57  ;;  %919 = vmatprep.subr.msk.mxu1 %vm1199_vm0, %v212_v55  ;;  %vm1733_vm13 = vcmp.ne.s32.totalorder %v1095_v20, 0 }
  0x8b   :  { %902 = vmatpush1.msk.msra.mxu0 %vm1208_vm3, %v211_v58  ;;  %920 = vmatpush1.msk.msra.mxu1 %vm1216_vm5, %v209_v56  ;;  %v275_v58 = vld [vmem:[%s1638_s1] sm:$0xff] }
  0x8c   :  { %v178_v59 = vpop.permute.xlu1 %177  ;;  %v176_v60 = vpop.permute.xlu0 %175 }
  0x8d   :  { %v186_v7 = vsel %vm1653_vm8, %v176_v60, %v178_v59 }
  0x90   :  { %v182_v61 = vpop.permute.xlu1 %181  ;;  %v180_v62 = vpop.permute.xlu0 %179 }
  0x91   :  { %v187_v63 = vsel %vm1653_vm8, %v182_v61, %v176_v60  ;;  %v184_v5 = vsel %vm1653_vm8, %v180_v62, %v182_v61  ;;  %v185_v6 = vsel %vm1653_vm8, %v178_v59, %v180_v62  ;;  %vm1692_vm8 = vcmp.ne.s32.totalorder %v1105_v25, 0 }
  0x92   :  { %903 = vmatprep.subr.msk.mxu0 %vm1657_vm2, %v185_v6  ;;  %921 = vmatprep.subr.msk.mxu1 %vm1688_vm1, %v187_v63  ;;  %vm1658_vm1 = vcmp.ne.s32.totalorder %v1099_v22, 0  ;;  %v276_v63 = vld [vmem:[%s1638_s1 + $0x8] sm:$0xff] }
  0x93   :  { %904 = vmatpush1.msk.msra.mxu0 %vm1689_vm7, %v186_v7  ;;  %922 = vmatpush1.msk.msra.mxu1 %vm1690_vm15, %v184_v5  ;;  %vm1691_vm7 = vcmp.ne.s32.totalorder %v1101_v23, 0  ;;  %vm1660_vm15 = vcmp.lt.s32.totalorder %v1087_v11, 15 }
  0x94   :  { %v153_v8 = vpop.permute.xlu1 %152  ;;  %318 = vmatprep.subr.mxu0 %v1013_v3  ;;  %v151_v9 = vpop.permute.xlu0 %150  ;;  %395 = vmatprep.subr.mxu1 %v1008_v2 }
  0x95   :  { %v161_v12 = vsel %vm1655_vm4, %v151_v9, %v153_v8  ;;  %319 = vmatpush1.msra.mxu0 %v999_v1  ;;  %396 = vmatpush1.msra.mxu1 %v994_v0 }
  0x96   :  { %905 = vmatprep.subr.msk.mxu0 %vm1654_vm14, %v161_v12  ;;  %vm1280_vm14 = vmand %vm1658_vm1, %vm1657_vm2  ;;  %vm1698_vm1 = vcmp.ne.s32.totalorder %v1101_v23, 15 }
  0x98   :  { %v157_v13 = vpop.permute.xlu1 %156  ;;  %v155_v14 = vpop.permute.xlu0 %154 }
  0x99   :  { %v162_v3 = vsel %vm1655_vm4, %v157_v13, %v151_v9  ;;  %v159_v2 = vsel %vm1655_vm4, %v155_v14, %v157_v13  ;;  %v160_v15 = vsel %vm1655_vm4, %v153_v8, %v155_v14  ;;  %vm1662_vm4 = vcmp.ne.s32.totalorder %v1095_v20, 0 }
  0x9a   :  { %906 = vmatpush1.msk.msra.mxu0 %vm1656_vm10, %v162_v3  ;;  %923 = vmatprep.subr.msk.mxu1 %vm1691_vm7, %v159_v2  ;;  %vm1669_vm10 = vcmp.ne.s32.totalorder %v1103_v24, 0  ;;  %vm1666_vm7 = vcmp.ne.s32.totalorder %v1107_v26, 0 }
  0x9b   :  { %924 = vmatpush1.msk.msra.mxu1 %vm1692_vm8, %v160_v15  ;;  %vm1695_vm8 = vcmp.ne.s32.totalorder %v1093_v19, 15  ;;  %vm1303_vm12 = vmand %vm1669_vm10, %vm1698_vm1 }
  0x9c   :  { %v128_v1 = vpop.permute.xlu1 %127  ;;  %v126_v16 = vpop.permute.xlu0 %125  ;;  %vm1295_vm2 = vmand %vm1662_vm4, %vm1695_vm8  ;;  %vm1704_vm8 = vcmp.lt.s32.totalorder %v1087_v11, 15 }
  0x9d   :  { %v136_v17 = vsel %vm1660_vm15, %v126_v16, %v128_v1  ;;  %vm1701_vm15 = vcmp.ne.s32.totalorder %v1105_v25, 15  ;;  %vm1705_vm4 = vmmov %vm1704_vm8 }
  0x9e   :  { %907 = vmatprep.subr.msk.mxu0 %vm1280_vm14, %v136_v17  ;;  %vm1311_vm9 = vmand %vm1666_vm7, %vm1701_vm15  ;;  %vm1665_vm15 = vcmp.lt.s32.totalorder %v1087_v11, 16 }
  0x9f   :  { %vm1706_vm1 = vmmov %vm1705_vm4 }
  0xa0   :  { %v132_v28 = vpop.permute.xlu1 %131  ;;  %v130_v32 = vpop.permute.xlu0 %129 }
  0xa1   :  { %v137_v35 = vsel %vm1704_vm8, %v132_v28, %v126_v16  ;;  %v134_v36 = vsel %vm1705_vm4, %v130_v32, %v132_v28  ;;  %v135_v37 = vsel %vm1706_vm1, %v128_v1, %v130_v32  ;;  %vm1707_vm4 = vcmp.ne.s32.totalorder %v1099_v22, 0 }
  0xa2   :  { %908 = vmatpush1.msk.msra.mxu0 %vm1295_vm2, %v137_v35  ;;  %925 = vmatprep.subr.msk.mxu1 %vm1303_vm12, %v134_v36  ;;  %vm1708_vm8 = vcmp.ne.s32.totalorder %v1095_v20, 0  ;;  %vm1667_vm1 = vcmp.lt.s32.totalorder %v1087_v11, 17 }
  0xa3   :  { %926 = vmatpush1.msk.msra.mxu1 %vm1311_vm9, %v135_v37 }
  0xa4   :  { %v103_v38 = vpop.permute.xlu1 %102  ;;  %v101_v39 = vpop.permute.xlu0 %100 }
  0xa5   :  { %v111_v40 = vsel %vm1665_vm15, %v101_v39, %v103_v38 }
  0xa6   :  { %909 = vmatprep.subr.msk.mxu0 %vm1707_vm4, %v111_v40  ;;  %vm1709_vm4 = vcmp.ne.s32.totalorder %v1097_v21, 0 }
  0xa7   :  { %vm1349_vm6 = vmand %vm1710_vm11, %vm1709_vm4  ;;  %vm1717_vm11 = vcmp.ne.s32.totalorder %v1101_v23, 0 }
  0xa8   :  { %v107_v41 = vpop.permute.xlu1 %106  ;;  %v105_v42 = vpop.permute.xlu0 %104  ;;  %vm1369_vm4 = vmand %vm1669_vm10, %vm1717_vm11  ;;  %vm1724_vm11 = vcmp.lt.s32.totalorder %v1087_v11, 17 }
  0xa9   :  { %v112_v43 = vsel %vm1665_vm15, %v107_v41, %v101_v39  ;;  %v109_v44 = vsel %vm1665_vm15, %v105_v42, %v107_v41  ;;  %v110_v45 = vsel %vm1665_vm15, %v103_v38, %v105_v42  ;;  %vm1714_vm15 = vcmp.ne.s32.totalorder %v1095_v20, 0 }
  0xaa   :  { %910 = vmatpush1.msk.msra.mxu0 %vm1708_vm8, %v112_v43  ;;  %927 = vmatprep.subr.msk.mxu1 %vm1669_vm10, %v109_v44  ;;  %vm1713_vm8 = vcmp.ne.s32.totalorder %v1093_v19, 0  ;;  %vm1725_vm10 = vmmov %vm1724_vm11  ;;  %v458_v44 = vld [vmem:[%s1639_s3] sm:$0xff] }
  0xab   :  { %928 = vmatpush1.msk.msra.mxu1 %vm1666_vm7, %v110_v45  ;;  %vm1361_vm7 = vmand %vm1714_vm15, %vm1713_vm8  ;;  %vm1720_vm15 = vcmp.ne.s32.totalorder %v1105_v25, 0  ;;  %vm1721_vm8 = vcmp.ne.s32.totalorder %v1107_v26, 0 }
  0xac   :  { %v78_v47 = vpop.permute.xlu1 %77  ;;  %v76_v48 = vpop.permute.xlu0 %75  ;;  %vm1380_vm0 = vmand %vm1721_vm8, %vm1720_vm15  ;;  %vm1730_vm8 = vcmp.lt.s32.totalorder %v1087_v11, 15 }
  0xad   :  { %v86_v52 = vsel %vm1667_vm1, %v76_v48, %v78_v47  ;;  %vm289_vm1 = vcmask 588800   ;;  %vm1726_vm5 = vmmov %vm1725_vm10 }
  0xae   :  { %911 = vmatprep.subr.msk.mxu0 %vm1349_vm6, %v86_v52 }
  0xb0   :  { %v82_v56 = vpop.permute.xlu1 %81  ;;  %v80_v57 = vpop.permute.xlu0 %79 }
  0xb1   :  { %v87_v60 = vsel %vm1724_vm11, %v82_v56, %v76_v48  ;;  %v84_v61 = vsel %vm1725_vm10, %v80_v57, %v82_v56  ;;  %v85_v62 = vsel %vm1726_vm5, %v78_v47, %v80_v57  ;;  %vm460_vm5 = vcmask 130048   ;;  %v459_v47 = vld [vmem:[%s1639_s3 + $0x8] sm:$0x1] }
  0xb2   :  { %912 = vmatpush1.msk.msra.mxu0 %vm1361_vm7, %v87_v60  ;;  %929 = vmatprep.subr.msk.mxu1 %vm1369_vm4, %v84_v61  ;;  %vm1727_vm10 = vcmp.lt.s32.totalorder %v1087_v11, 16 }
  0xb3   :  { %913 = vmatmul.mubr.msk.f32.vlgmr.msra.gmra.mxu0 %vm289_vm1, %v275_v58  ;;  %930 = vmatpush1.msk.msra.mxu1 %vm1380_vm0, %v85_v62 }
  0xb4   :  { %931 = vmatmul.mubr.msk.f32.vlgmr.msra.gmra.mxu1 %vm289_vm1, %v275_v58  ;;  %366 = vmatprep.mubr.f32.mxu0 %v957_v4 }
  0xb5   :  { %443 = vmatprep.mubr.f32.mxu1 %v957_v4 }
  0xb7   :  { %914 = vmatmul.mubr.msk.f32.gmra.mxu0 %vm289_vm1, %v276_v63 }
  0xb8   :  { %932 = vmatmul.mubr.msk.f32.gmra.mxu1 %vm289_vm1, %v276_v63  ;;  %531 = vmatprep.mubr.f32.mxu0 %v957_v4  ;;  %vm1728_vm1 = vmmov %vm1724_vm11 }
  0xb9   :  { %608 = vmatprep.mubr.f32.mxu1 %v957_v4  ;;  %vm1729_vm15 = vmmov %vm1728_vm1 }
  0xba   :  { %vm1731_vm11 = vmmov %vm1728_vm1 }
  0xbd   :  { %v287_v9 = vpop.permute.xlu0 %286  ;;  %v282_v13 = vpop.permute.xlu1 %281 }
 0x173   :  { %v362_v5 = vpop.f32.mrf.mxu0 }
 0x174   :  { %v439_v6 = vpop.f32.mrf.mxu1  ;;  %v363_v28 = vadd.f32 %v362_v5, %v282_v13 }
 0x175   :  { %v364_v7 = vpop.f32.mrf.mxu0  ;;  %v440_v36 = vadd.f32 %v439_v6, %v282_v13 }
 0x176   :  { %v441_v8 = vpop.f32.mrf.mxu1  ;;  %v365_v15 = vadd.f32 %v364_v7, %v282_v13  ;;  %v450_v42 = vmax.f32 %v363_v28, 0.0 }
 0x177   :  { %v368_v12 = vpop.f32.mrf.mxu0  ;;  %v442_v32 = vadd.f32 %v441_v8, %v282_v13  ;;  %v452_v45 = vmax.f32 %v440_v36, 0.0 }
 0x178   :  { %v445_v14 = vpop.f32.mrf.mxu1  ;;  %v369_v3 = vadd.f32 %v368_v12, %v287_v9  ;;  %v451_v40 = vmax.f32 %v365_v15, 0.0 }
 0x179   :  { %v370_v2 = vpop.f32.mrf.mxu0  ;;  %v446_v1 = vadd.f32 %v445_v14, %v287_v9  ;;  %v453_v43 = vmax.f32 %v442_v32, 0.0 }
 0x17a   :  { %v371_v16 = vadd.f32 %v370_v2, %v287_v9  ;;  %v447_v17 = vpop.f32.mrf.mxu1  ;;  %v454_v38 = vmax.f32 %v369_v3, 0.0 }
 0x17b   :  { %v448_v35 = vadd.f32 %v447_v17, %v287_v9  ;;  %v456_v41 = vmax.f32 %v446_v1, 0.0 }
 0x17c   :  { %v455_v37 = vmax.f32 %v371_v16, 0.0 }
 0x17d   :  { %v457_v39 = vmax.f32 %v448_v35, 0.0 }
 0x17e   :  { %495 = vmatprep.subr.mxu0 %v455_v37 }
 0x17f   :  { %496 = vmatpush1.msra.mxu0 %v454_v38  ;;  %572 = vmatprep.subr.mxu1 %v457_v39 }
 0x180   :  { %497 = vmatprep.subr.mxu0 %v451_v40  ;;  %573 = vmatpush1.msra.mxu1 %v456_v41  ;;  %v1479_v41 = vpop.permute.xlu1 %848 }
 0x181   :  { %498 = vmatpush1.msra.mxu0 %v450_v42  ;;  %574 = vmatprep.subr.mxu1 %v453_v43 }
 0x182   :  { %933 = vmatmul.mubr.msk.f32.vlgmr.msra.gmra.mxu0 %vm460_vm5, %v458_v44  ;;  %575 = vmatpush1.msra.mxu1 %v452_v45 }
 0x183   :  { %935 = vmatmul.mubr.msk.f32.vlgmr.msra.gmra.mxu1 %vm460_vm5, %v458_v44  ;;  %537 = vmatprep.mubr.f32.mxu0 %v957_v4 }
 0x184   :  { %614 = vmatprep.mubr.f32.mxu1 %v957_v4 }
 0x186   :  { %934 = vmatmul.mubr.msk.f32.gmra.mxu0 %vm460_vm5, %v459_v47 }
 0x187   :  { %936 = vmatmul.mubr.msk.f32.gmra.mxu1 %vm460_vm5, %v459_v47  ;;  %vm1732_vm5 = vmmov %vm1727_vm10 }
 0x242   :  { %v1411_v48 = vpop.f32.mrf.mxu0 }
 0x243   :  { %621 = vrot.lane.b32.xlu1 %v1411_v48, %s959_s9  ;;  %v1417_v56 = vpop.f32.mrf.mxu1  ;;  %v645_v4 = vrot.slane %v1411_v48, 1  ;;  %v797_v58 = vrot.slane %v1411_v48, 7  ;;  %v673_v62 = vrot.slane %v1411_v48, 2  ;;  %v701_v7 = vrot.slane %v1411_v48, 3 }
 0x244   :  { %v1415_v52 = vpop.f32.mrf.mxu0  ;;  %v647_v60 = vrot.slane %v1417_v56, 1  ;;  %v799_v61 = vrot.slane %v1417_v56, 7  ;;  %v675_v5 = vrot.slane %v1417_v56, 2  ;;  %v703_v9 = vrot.slane %v1417_v56, 3 }
 0x245   :  { %623 = vrot.lane.b32.xlu0 %v1415_v52, %s959_s9  ;;  %v1423_v57 = vpop.f32.mrf.mxu1  ;;  %v646_v63 = vrot.slane %v1415_v52, 1  ;;  %v674_v8 = vrot.slane %v1415_v52, 2  ;;  %v741_v13 = vrot.slane %v1411_v48, 5  ;;  %v702_v14 = vrot.slane %v1415_v52, 3 }
 0x246   :  { %v648_v6 = vrot.slane %v1423_v57, 1  ;;  %v676_v12 = vrot.slane %v1423_v57, 2  ;;  %v743_v3 = vrot.slane %v1417_v56, 5  ;;  %v704_v2 = vrot.slane %v1423_v57, 3  ;;  %v539_v35 = vpop.f32.mrf.mxu0 }
 0x247   :  { %625 = vrot.lane.b32.xlu1 %v1417_v56, %s959_s9  ;;  %v769_v15 = vrot.slane %v1411_v48, 6  ;;  %v742_v1 = vrot.slane %v1415_v52, 5  ;;  %v771_v16 = vrot.slane %v1417_v56, 6  ;;  %v744_v17 = vrot.slane %v1423_v57, 5  ;;  %v616_v39 = vpop.f32.mrf.mxu1 }
 0x248   :  { %v798_v28 = vrot.slane %v1415_v52, 7  ;;  %v770_v32 = vrot.slane %v1415_v52, 6  ;;  %v800_v36 = vrot.slane %v1423_v57, 7  ;;  %v772_v37 = vrot.slane %v1423_v57, 6  ;;  %v541_v38 = vpop.f32.mrf.mxu0 }
 0x249   :  { %627 = vrot.lane.b32.xlu0 %v1423_v57, %s959_s9  ;;  %v618_v40 = vpop.f32.mrf.mxu1  ;;  %v729_v33 = vrot.slane %v1411_v48, 4 }
 0x24b   :  { %653 = vrot.lane.b32.xlu1 %v645_v4, %s956_s6 }
 0x24d   :  { %805 = vrot.lane.b32.xlu0 %v797_v58, %s951_s27 }
 0x24f   :  { %657 = vrot.lane.b32.xlu1 %v647_v60, %s956_s6 }
 0x251   :  { %809 = vrot.lane.b32.xlu0 %v799_v61, %s951_s27 }
 0x253   :  { %681 = vrot.lane.b32.xlu1 %v673_v62, %s955_s30 }
 0x255   :  { %655 = vrot.lane.b32.xlu0 %v646_v63, %s956_s6 }
 0x257   :  { %685 = vrot.lane.b32.xlu1 %v675_v5, %s955_s30 }
 0x259   :  { %659 = vrot.lane.b32.xlu0 %v648_v6, %s956_s6 }
 0x25b   :  { %709 = vrot.lane.b32.xlu1 %v701_v7, %s954_s29 }
 0x25d   :  { %683 = vrot.lane.b32.xlu0 %v674_v8, %s955_s30 }
 0x25f   :  { %713 = vrot.lane.b32.xlu1 %v703_v9, %s954_s29 }
 0x261   :  { %687 = vrot.lane.b32.xlu0 %v676_v12, %s955_s30 }
 0x263   :  { %749 = vrot.lane.b32.xlu1 %v741_v13, %s953_s28 }
 0x265   :  { %711 = vrot.lane.b32.xlu0 %v702_v14, %s954_s29 }
 0x267   :  { %753 = vrot.lane.b32.xlu1 %v743_v3, %s953_s28 }
 0x269   :  { %715 = vrot.lane.b32.xlu0 %v704_v2, %s954_s29 }
 0x26b   :  { %777 = vrot.lane.b32.xlu1 %v769_v15, %s952_s0 }
 0x26d   :  { %751 = vrot.lane.b32.xlu0 %v742_v1, %s953_s28 }
 0x26f   :  { %781 = vrot.lane.b32.xlu1 %v771_v16, %s952_s0 }
 0x271   :  { %755 = vrot.lane.b32.xlu0 %v744_v17, %s953_s28 }
 0x273   :  { %807 = vrot.lane.b32.xlu1 %v798_v28, %s951_s27 }
 0x275   :  { %779 = vrot.lane.b32.xlu0 %v770_v32, %s952_s0 }
 0x277   :  { %811 = vrot.lane.b32.xlu1 %v800_v36, %s951_s27 }
 0x279   :  { %783 = vrot.lane.b32.xlu0 %v772_v37, %s952_s0 }
 0x27b   :  { %827 = vrot.lane.b32.xlu1 %v541_v38, %s950_s22 }
 0x27d   :  { %825 = vrot.lane.b32.xlu0 %v539_v35, %s950_s22 }
 0x27f   :  { %831 = vrot.lane.b32.xlu1 %v618_v40, %s950_s22 }
 0x281   :  { %829 = vrot.lane.b32.xlu0 %v616_v39, %s950_s22 }
 0x2b5   :  { %v622_v42 = vpop.permute.xlu1 %621 }
 0x2b7   :  { %v624_v43 = vpop.permute.xlu0 %623 }
 0x2b8   :  { %v631_v3 = vsel %vm1728_vm1, %v622_v42, %v624_v43 }
 0x2b9   :  { %v626_v44 = vpop.permute.xlu1 %625  ;;  %v634_v35 = vsel %vm1349_vm6, %v631_v3, 0.0  ;;  %vm1739_vm6 = vcmp.ne.s32.totalorder %v1103_v24, 0 }
 0x2bb   :  { %v628_v45 = vpop.permute.xlu0 %627 }
 0x2bc   :  { %v632_v15 = vsel %vm1729_vm15, %v628_v45, %v622_v42  ;;  %v629_v16 = vsel %vm1731_vm11, %v626_v44, %v628_v45  ;;  %vm1736_vm15 = vcmp.lt.s32.totalorder %v1087_v11, 1  ;;  %vm1741_vm11 = vcmp.ne.s32.totalorder %v1099_v22, 0 }
 0x2bd   :  { %v654_v47 = vpop.permute.xlu1 %653  ;;  %v633_v39 = vsel %vm1361_vm7, %v632_v15, 0.0 }
 0x2bf   :  { %v1481_v4 = vpop.permute.xlu0 %805 }
 0x2c1   :  { %v658_v58 = vpop.permute.xlu1 %657 }
 0x2c3   :  { %v1483_v60 = vpop.permute.xlu0 %809 }
 0x2c5   :  { %v682_v61 = vpop.permute.xlu1 %681 }
 0x2c7   :  { %v656_v62 = vpop.permute.xlu0 %655 }
 0x2c9   :  { %v686_v63 = vpop.permute.xlu1 %685 }
 0x2cb   :  { %v660_v5 = vpop.permute.xlu0 %659 }
 0x2cc   :  { %v664_v14 = vsel %vm1727_vm10, %v660_v5, %v654_v47  ;;  %v661_v17 = vsel %vm1732_vm5, %v658_v58, %v660_v5  ;;  %vm1734_vm10 = vmmov %vm1728_vm1 }
 0x2cd   :  { %v710_v6 = vpop.permute.xlu1 %709  ;;  %v665_v28 = vsel %vm1733_vm13, %v664_v14, 0.0  ;;  %v630_v36 = vsel %vm1734_vm10, %v624_v43, %v626_v44  ;;  %vm1735_vm1 = vmmov %vm1732_vm5  ;;  %vm1738_vm13 = vcmp.lt.s32.totalorder %v1087_v11, 15  ;;  %v636_v43 = vsel %vm1369_vm4, %v629_v16, 0.0 }
 0x2ce   :  { %v663_v37 = vsel %vm1735_vm1, %v654_v47, %v656_v62  ;;  %v668_v44 = vsel %vm1739_vm6, %v661_v17, 0.0  ;;  %v669_v47 = vadd.f32 %v665_v28, %v633_v39  ;;  %vm1740_vm7 = vmmov %vm1738_vm13  ;;  %vm1744_vm10 = vcmp.ne.s32.totalorder %v1093_v19, 0 }
 0x2cf   :  { %v684_v7 = vpop.permute.xlu0 %683  ;;  %vm1742_vm5 = vmmov %vm1740_vm7  ;;  %vm1745_vm4 = vcmp.ne.s32.totalorder %v1107_v26, 0  ;;  %vm1754_vm6 = vcmp.ne.s32.totalorder %v1093_v19, 15 }
 0x2d0   :  { %v691_v53 = vsel %vm1740_vm7, %v682_v61, %v684_v7 }
 0x2d1   :  { %v714_v8 = vpop.permute.xlu1 %713  ;;  %v694_v15 = vsel %vm1280_vm14, %v691_v53, 0.0  ;;  %vm1750_vm14 = vcmp.ne.s32.totalorder %v1105_v25, 0 }
 0x2d3   :  { %v688_v9 = vpop.permute.xlu0 %687 }
 0x2d4   :  { %v692_v1 = vsel %vm1730_vm8, %v688_v9, %v682_v61  ;;  %vm1737_vm8 = vmmov %vm1735_vm1  ;;  %v689_v42 = vsel %vm1738_vm13, %v686_v63, %v688_v9 }
 0x2d5   :  { %v750_v12 = vpop.permute.xlu1 %749  ;;  %v662_v40 = vsel %vm1737_vm8, %v656_v62, %v658_v58  ;;  %v693_v46 = vsel %vm1295_vm2, %v692_v1, 0.0  ;;  %v666_v58 = vsel %vm1741_vm11, %v663_v37, 0.0  ;;  %v690_v62 = vsel %vm1742_vm5, %v684_v7, %v686_v63  ;;  %vm1743_vm2 = vmmov %vm1736_vm15 }
 0x2d6   :  { %v667_v9 = vsel %vm1745_vm4, %v662_v40, 0.0  ;;  %v696_v14 = vsel %vm1303_vm12, %v689_v42, 0.0  ;;  %v697_v61 = vadd.f32 %v693_v46, %v669_v47  ;;  %vm1746_vm1 = vmmov %vm1743_vm2  ;;  %v635_v63 = vsel %vm1380_vm0, %v630_v36, 0.0 }
 0x2d7   :  { %v712_v13 = vpop.permute.xlu0 %711  ;;  %v672_v7 = vadd.f32 %v668_v44, %v636_v43  ;;  %v670_v17 = vadd.f32 %v666_v58, %v634_v35  ;;  %v695_v27 = vsel %vm1311_vm9, %v690_v62, 0.0  ;;  %vm1748_vm12 = vcmp.ne.s32.totalorder %v1101_v23, 0 }
 0x2d8   :  { %v719_v3 = vsel %vm1746_vm1, %v710_v6, %v712_v13  ;;  %v671_v59 = vadd.f32 %v667_v9, %v635_v63  ;;  %vm1749_vm0 = vcmp.ne.s32.totalorder %v1097_v21, 0  ;;  %vm1751_vm9 = vcmp.lt.s32.totalorder %v1087_v11, 127 }
 0x2d9   :  { %v754_v2 = vpop.permute.xlu1 %753  ;;  %v700_v36 = vadd.f32 %v696_v14, %v672_v7  ;;  %v722_v0 = vsel %vm1749_vm0, %v719_v3, 0.0  ;;  %vm1752_vm8 = vmmov %vm1751_vm9  ;;  %v732_v44 = vrot.slane %v1423_v57, 4  ;;  %vm1756_vm11 = vcmp.ne.s32.totalorder %v1101_v23, 15 }
 0x2da   :  { %v699_v35 = vadd.f32 %v695_v27, %v671_v59  ;;  %vm1753_vm13 = vmmov %vm1752_vm8  ;;  %vm1757_vm5 = vcmp.lt.s32.totalorder %v1087_v11, 113  ;;  %vm1760_vm4 = vcmp.ne.s32.totalorder %v1105_v25, 15  ;;  %vm1765_vm0 = vnez %v1687_v54 }
 0x2db   :  { %v716_v32 = vpop.permute.xlu0 %715  ;;  %vm1755_vm7 = vmmov %vm1752_vm8 }
 0x2dc   :  { %v720_v38 = vsel %vm1736_vm15, %v716_v32, %v710_v6  ;;  %v717_v18 = vsel %vm1743_vm2, %v714_v8, %v716_v32  ;;  %vm1747_vm15 = vmmov %vm1746_vm1  ;;  %v1548_v6 = vshrl.u32 %v26_v10, 7  ;;  %vm1761_vm1 = vcmp.lt.s32.totalorder %v1087_v11, 112 }
 0x2dd   :  { %v1515_v45 = vpop.permute.xlu1 %777  ;;  %v721_v55 = vsel %vm1744_vm10, %v720_v38, 0.0  ;;  %v718_v1 = vsel %vm1747_vm15, %v712_v13, %v714_v8  ;;  %v724_v28 = vsel %vm1748_vm12, %v717_v18, 0.0  ;;  %v698_v38 = vadd.f32 %v694_v15, %v670_v17  ;;  %vm1758_vm2 = vmmov %vm1757_vm5 }
 0x2de   :  { %v725_v32 = vadd.f32 %v721_v55, %v697_v61  ;;  %v723_v8 = vsel %vm1750_vm14, %v718_v1, 0.0  ;;  %v728_v39 = vadd.f32 %v724_v28, %v700_v36  ;;  %v853_v18 = vsub.s32 0, %v1548_v6  ;;  %vm1764_vm12 = vmmov %vm1758_vm2 }
 0x2df   :  { %v752_v5 = vpop.permute.xlu0 %751  ;;  %v726_v46 = vadd.f32 %v722_v0, %v698_v38  ;;  %v727_v47 = vadd.f32 %v723_v8, %v699_v35  ;;  %vm1759_vm10 = vcmp.ne.s32.totalorder %v1097_v21, 15  ;;  %vm1762_vm15 = vnez %v1681_v49 }
 0x2e0   :  { %v759_v13 = vsel %vm1751_vm9, %v750_v12, %v752_v5  ;;  %v737_v43 = vadd.f32 %v729_v33, %v725_v32  ;;  %v758_v53 = vsel %vm1753_vm13, %v752_v5, %v754_v2  ;;  %v731_v5 = vrot.slane %v1417_v56, 4  ;;  %vm1767_vm9 = vmmov %vm1761_vm1 }
 0x2e1   :  { %v782_v16 = vpop.permute.xlu1 %781  ;;  %v761_v48 = vsel %vm1754_vm6, %v759_v13, 0.0  ;;  %v740_v9 = vadd.f32 %v732_v44, %v728_v39  ;;  %vm1766_vm14 = vnez %v1683_v50  ;;  %v960_v36 = vmov 1966171168   ;;  %vm1770_vm6 = vmmov %vm1761_vm1 }
 0x2e2   :  { %v765_v61 = vadd.f32 %v761_v48, %v737_v43  ;;  %v739_v63 = vadd.f32 %v731_v5, %v727_v47  ;;  %v866_v49 = vunpack.c.l.s4 %v960_v36  ;;  %vm1769_vm13 = vcmp.ne.s32.totalorder %v1095_v20, 15 }
 0x2e3   :  { %v756_v37 = vpop.permute.xlu0 %755  ;;  %v854_v35 = vrot.slane %v1479_v41, %v853_v18 }
 0x2e4   :  { %v760_v40 = vsel %vm1752_vm8, %v756_v37, %v750_v12  ;;  %v757_v58 = vsel %vm1755_vm7, %v754_v2, %v756_v37  ;;  %v730_v12 = vrot.slane %v1415_v52, 4  ;;  %v762_v52 = vsel %vm1759_vm10, %v758_v53, 0.0  ;;  %vm1768_vm8 = vmmov %vm1761_vm1 }
 0x2e5   :  { %v808_v42 = vpop.permute.xlu1 %807  ;;  %v764_v55 = vsel %vm1756_vm11, %v760_v40, 0.0  ;;  %v763_v23 = vsel %vm1760_vm4, %v757_v58, 0.0  ;;  %vm1771_vm7 = vcmp.lt.s32.totalorder %v1087_v11, 111  ;;  %vm1772_vm11 = vcmp.ne.s32.totalorder %v1099_v22, 15 }
 0x2e6   :  { %v738_v3 = vadd.f32 %v730_v12, %v726_v46  ;;  %v768_v7 = vadd.f32 %v764_v55, %v740_v9  ;;  %v815_v56 = vsel %vm1761_vm1, %v1481_v4, %v808_v42  ;;  %v767_v27 = vadd.f32 %v763_v23, %v739_v63  ;;  %vm1776_vm4 = vmmov %vm1771_vm7 }
 0x2e7   :  { %v780_v62 = vpop.permute.xlu0 %779  ;;  %v814_v0 = vsel %vm1767_vm9, %v808_v42, %v1483_v60  ;;  %v817_v37 = vsel %vm1769_vm13, %v815_v56, 0.0  ;;  %vm1775_vm10 = vcmp.ne.s32.totalorder %v1107_v26, 15  ;;  %v867_v44 = vunpack.c.0.s8 %v866_v49 }
 0x2e8   :  { %v787_v57 = vsel %vm1757_vm5, %v1515_v45, %v780_v62  ;;  %v786_v19 = vsel %vm1758_vm2, %v780_v62, %v782_v16  ;;  %v766_v17 = vadd.f32 %v762_v52, %v738_v3  ;;  %vm1773_vm5 = vcmp.ne.s32.totalorder %v1103_v24, 15 }
 0x2e9   :  { %v789_v2 = vsel %vm1208_vm3, %v787_v57, 0.0  ;;  %v812_v14 = vpop.permute.xlu1 %811  ;;  %v790_v51 = vsel %vm1762_vm15, %v786_v19, 0.0  ;;  %vm1763_vm3 = vmmov %vm1758_vm2  ;;  %vm1774_vm2 = vnez %v1673_v29  ;;  %vm1777_vm1 = vnez %v1677_v31 }
 0x2ea   :  { %v793_v1 = vadd.f32 %v789_v2, %v765_v61  ;;  %v794_v54 = vadd.f32 %v790_v51, %v766_v17  ;;  %v813_v50 = vsel %vm1770_vm6, %v1483_v60, %v812_v14  ;;  %vm1778_vm15 = vmmov %vm1776_vm4  ;;  %v870_v55 = vsub.s32 %v867_v44, %v1548_v6 }
 0x2eb   :  { %v784_v15 = vpop.permute.xlu0 %783  ;;  %v819_v60 = vsel %vm1775_vm10, %v813_v50, 0.0 }
 0x2ec   :  { %v785_v21 = vsel %vm1763_vm3, %v782_v16, %v784_v15  ;;  %v788_v25 = vsel %vm1764_vm12, %v784_v15, %v1515_v45  ;;  %v816_v16 = vsel %vm1768_vm8, %v812_v14, %v1481_v4  ;;  %v821_v33 = vadd.f32 %v817_v37, %v793_v1  ;;  %vm1779_vm3 = vmmov %vm1776_vm4 }
 0x2ed   :  { %v791_v28 = vsel %vm1765_vm0, %v785_v21, 0.0  ;;  %v792_v32 = vsel %vm1766_vm14, %v788_v25, 0.0  ;;  %v828_v59 = vpop.permute.xlu1 %827  ;;  %v818_v4 = vsel %vm1772_vm11, %v814_v0, 0.0  ;;  %v820_v20 = vsel %vm1773_vm5, %v816_v16, 0.0 }
 0x2ee   :  { %v796_v45 = vadd.f32 %v792_v32, %v768_v7  ;;  %v795_v38 = vadd.f32 %v791_v28, %v767_v27  ;;  %v822_v41 = vadd.f32 %v818_v4, %v794_v54  ;;  %vm1780_vm12 = vnez %v1675_v30 }
 0x2ef   :  { %v826_v8 = vpop.permute.xlu0 %825  ;;  %vm1781_vm0 = vnez %v1679_v34  ;;  %vm890_vm14 = vcmp.lt.s32.totalorder %v26_v10, 512 }
 0x2f0   :  { %v835_v13 = vsel %vm1771_vm7, %v826_v8, %v828_v59  ;;  %v824_v46 = vadd.f32 %v820_v20, %v796_v45  ;;  %v823_v47 = vadd.f32 %v819_v60, %v795_v38 }
 0x2f1   :  { %v837_v39 = vsel %vm1774_vm2, %v835_v13, 0.0  ;;  %v832_v40 = vpop.permute.xlu1 %831 }
 0x2f2   :  { %v841_v42 = vadd.f32 %v837_v39, %v821_v33  ;;  %v836_v43 = vsel %vm1776_vm4, %v832_v40, %v826_v8 }
 0x2f3   :  { %v840_v22 = vsel %vm1777_vm1, %v836_v43, 0.0  ;;  %v830_v24 = vpop.permute.xlu0 %829 }
 0x2f4   :  { %v855_v53 = vadd.f32 %v854_v35, %v841_v42  ;;  %v844_v48 = vadd.f32 %v840_v22, %v824_v46  ;;  %v833_v29 = vsel %vm1778_vm15, %v830_v24, %v832_v40  ;;  %v834_v26 = vsel %vm1779_vm3, %v828_v59, %v830_v24 }
 0x2f5   :  { %v838_v58 = vsel %vm1780_vm12, %v834_v26, 0.0  ;;  %v839_v62 = vsel %vm1781_vm0, %v833_v29, 0.0 }
 0x2f6   :  { %v858_v18 = vadd.f32 %v854_v35, %v844_v48  ;;  %v842_v31 = vadd.f32 %v838_v58, %v822_v41  ;;  %v843_v12 = vadd.f32 %v839_v62, %v823_v47 }
 0x2f8   :  { %v856_v57 = vadd.f32 %v854_v35, %v842_v31  ;;  %v857_v5 = vadd.f32 %v854_v35, %v843_v12 }
 0x2fa   :  { %v863_v9 = vcombine.low %v855_v53, %v856_v57  ;;  %v864_v19 = vcombine.low %v857_v5, %v858_v18 }
 0x2fc   :  { %v871_v2 = vrot.slane %v863_v9, %v870_v55  ;;  %v878_v14 = vrot.slane %v864_v19, %v870_v55 }
 0x2fe   :  { %v879_v52 = vcombine.low %v871_v2, %v878_v14 }
 0x300   :  { %v886_v11 = vrot.slane %v879_v52, %v870_v55 }
 0x302   :  { %892 = vst.msk [vmem:[%s1640_s5] sm:$0xf] %vm890_vm14, %v886_v11 }

</bundles_post_ra>
